<compile_context>
chip_gen: v5e
topology: v5e:2x2
jax: 0.10.0
libtpu: 0.0.40
codegen_flags: <defaults>
</compile_context>

<pallas_src>
import functools

import jax
import jax.numpy as jnp
from jax.experimental import pallas as pl
from jax.experimental.pallas import tpu as pltpu


def _masked_mean_kernel(lens_ref, x_ref, out_ref, acc_ref, *, time_axis, l_tile):
    """One (batch-tile, channel-tile, time-tile) step of the masked mean.

    lens_ref : VMEM int32 (B_TILE, 1)                    valid frame counts
    x_ref    : VMEM (B_TILE, C_TILE, L_TILE)  if time_axis == 2
               VMEM (B_TILE, L_TILE, C_TILE)  if time_axis == 1
    out_ref  : VMEM (B_TILE, C_TILE)                     written on last time tile
    acc_ref  : VMEM f32 (B_TILE, C_TILE)                 running masked sum
    """
    l = pl.program_id(2)
    n_l = pl.num_programs(2)

    @pl.when(l == 0)
    def _():
        acc_ref[...] = jnp.zeros_like(acc_ref)

    x = x_ref[...].astype(jnp.float32)
    bsz = x.shape[0]
    lens = lens_ref[...].reshape(bsz, 1, 1)                      # (B, 1, 1) int32

    if time_axis == 2:                                           # x: (B, Ct, Lt)
        t_idx = jax.lax.broadcasted_iota(jnp.int32, (bsz, 1, x.shape[2]), 2)
    else:                                                        # x: (B, Lt, Ct)
        t_idx = jax.lax.broadcasted_iota(jnp.int32, (bsz, x.shape[1], 1), 1)
    t_idx = t_idx + l * l_tile                                   # global frame index
    mask = t_idx < lens                                          # broadcast over C

    # Zero out padded / out-of-range frames on x itself (NaN-safe), then reduce
    # over the time axis of this tile and accumulate in f32.
    xm = jnp.where(mask, x, 0.0)
    acc_ref[...] += jnp.sum(xm, axis=time_axis)

    @pl.when(l == n_l - 1)
    def _():
        inv = 1.0 / lens_ref[...].astype(jnp.float32)            # (B, 1); len==0 -> NaN out
        out_ref[...] = (acc_ref[...] * inv).astype(out_ref.dtype)


def _pick_tile(dim, target, align):
    """Largest legal tile: full dim if small, else a multiple of `align` <= target
    (preferring exact divisors of `dim` to avoid edge blocks)."""
    if dim <= target or dim <= align:
        return dim                                   # full-extent tile is always legal
    top = max(align, (target // align) * align)
    for cand in range(top, 0, -align):
        if dim % cand == 0:
            return cand
    return top                                       # non-divisor: edge block is handled


def mean_stat_pool_1d(x, lengths, dim_to_reduce=2):
    """x: [N, C, L] if dim_to_reduce == 2 else [N, L, C]; lengths: int frame counts."""
    if dim_to_reduce not in (1, 2):
        raise ValueError("dim_to_reduce should be either 1 or 2")
    x = jnp.asarray(x)                               # native dtype (no f32 upcast)
    lengths = jnp.asarray(lengths, jnp.int32).reshape(-1, 1)     # (N, 1) for VMEM
    N = x.shape[0]
    if dim_to_reduce == 2:
        _, C, L = x.shape
    else:
        _, L, C = x.shape

    B_TILE = N if N < 8 else 8                       # fills output sublanes
    C_TILE = _pick_tile(C, 256, 128)                 # lane dim of the output store
    if dim_to_reduce == 2:
        L_TILE = _pick_tile(L, 512, 128)             # time on lanes
        block = (B_TILE, C_TILE, L_TILE)
        x_index_map = lambda b, c, l: (b, c, l)
        time_axis = 2
    else:
        L_TILE = _pick_tile(L, 512, 8)               # time on sublanes
        block = (B_TILE, L_TILE, C_TILE)
        x_index_map = lambda b, c, l: (b, l, c)
        time_axis = 1

    grid = (pl.cdiv(N, B_TILE), pl.cdiv(C, C_TILE), pl.cdiv(L, L_TILE))
    kernel = functools.partial(_masked_mean_kernel, time_axis=time_axis, l_tile=L_TILE)

    return pl.pallas_call(
        kernel,
        out_shape=jax.ShapeDtypeStruct((N, C), x.dtype),
        grid_spec=pltpu.PrefetchScalarGridSpec(
            num_scalar_prefetch=0,
            grid=grid,
            in_specs=[
                pl.BlockSpec((B_TILE, 1), lambda b, c, l: (b, 0)),   # lengths
                pl.BlockSpec(block, x_index_map),                    # x
            ],
            out_specs=pl.BlockSpec((B_TILE, C_TILE), lambda b, c, l: (b, c)),
            scratch_shapes=[pltpu.VMEM((B_TILE, C_TILE), jnp.float32)],
        ),
        compiler_params=pltpu.CompilerParams(
            # batch & channel tiles are independent -> shard across v7x's two TCs;
            # time axis carries the accumulator -> arbitrary.
            dimension_semantics=("parallel", "parallel", "arbitrary"),
        ),
    )(lengths, x)


def reference(x, lengths, dim_to_reduce=2):
    """Pure-JAX reference of MeanStatPool1D.forward (masked mean over padded axis)."""
    x = jnp.asarray(x, jnp.float32)
    lengths = jnp.asarray(lengths, jnp.int32)
    T = x.shape[dim_to_reduce]
    mask = jnp.arange(T)[None, :] < lengths[:, None]             # (N, T)
    m = mask[:, None, :] if dim_to_reduce == 2 else mask[:, :, None]
    s = jnp.sum(jnp.where(m, x, 0.0), axis=dim_to_reduce)
    return s / lengths[:, None].astype(jnp.float32)


if __name__ == "__main__":
    key = jax.random.PRNGKey(0)
    k1, k2, k3, k4 = jax.random.split(key, 4)

    # 1) dim_to_reduce = 2 (default NCW layout): x is [N, C, L]
    N, C, L = 2, 8, 16
    x = jax.random.normal(k1, (N, C, L), jnp.float32)
    lengths = jnp.array([16, 7], jnp.int32)                      # absolute valid lengths
    out = jax.block_until_ready(mean_stat_pool_1d(x, lengths, dim_to_reduce=2))
    ref = reference(x, lengths, dim_to_reduce=2)
    assert out.shape == (N, C)
    assert jnp.allclose(out, ref, rtol=1e-5, atol=1e-5), (out, ref)

    # 2) dim_to_reduce = 1 (time-major layout): x is [N, L, C]
    x1 = jax.random.normal(k2, (N, L, C), jnp.float32)
    lengths1 = jnp.array([5, 16], jnp.int32)
    out1 = jax.block_until_ready(mean_stat_pool_1d(x1, lengths1, dim_to_reduce=1))
    ref1 = reference(x1, lengths1, dim_to_reduce=1)
    assert out1.shape == (N, C)
    assert jnp.allclose(out1, ref1, rtol=1e-5, atol=1e-5), (out1, ref1)

    # 3) shape that exercises the time-tile accumulator and a padded edge block
    N2, C2, L2 = 4, 128, 600                                     # L_TILE=512 -> 2 time tiles
    x2 = jax.random.normal(k3, (N2, C2, L2), jnp.float32)
    lengths2 = jnp.array([600, 1, 313, 517], jnp.int32)
    out2 = jax.block_until_ready(mean_stat_pool_1d(x2, lengths2, dim_to_reduce=2))
    ref2 = reference(x2, lengths2, dim_to_reduce=2)
    assert out2.shape == (N2, C2)
    assert jnp.allclose(out2, ref2, rtol=1e-5, atol=1e-5)

    # 4) native bf16 input (no wrapper upcast; f32 accumulation inside the kernel)
    xb = jax.random.normal(k4, (N, C, L), jnp.float32).astype(jnp.bfloat16)
    outb = jax.block_until_ready(mean_stat_pool_1d(xb, lengths, dim_to_reduce=2))
    refb = reference(xb, lengths, dim_to_reduce=2)
    assert outb.dtype == jnp.bfloat16
    assert jnp.allclose(outb.astype(jnp.float32), refb, rtol=2e-2, atol=2e-2)

    print("KERNEL_OK")
</pallas_src>

<mosaic_0001>
module attributes {stable_mosaic.version = 11 : i64} {
  func.func @_masked_mean_kernel(%arg0: i32, %arg1: i32, %arg2: i32, %arg3: memref<2x1xi32, #tpu.memory_space<vmem>>, %arg4: memref<2x8x16xf32, #tpu.memory_space<vmem>>, %arg5: memref<2x8xf32, #tpu.memory_space<vmem>>, %arg6: memref<2x8xf32, #tpu.memory_space<vmem>>) attributes {dimension_semantics = [#tpu.dimension_semantics<parallel>, #tpu.dimension_semantics<parallel>, #tpu.dimension_semantics<arbitrary>], iteration_bounds = array<i64: 1, 1, 1>, scalar_prefetch = 0 : i64, scratch_operands = 1 : i64, tpu.core_type = #tpu.core_type<tc>, window_params = [{transform_indices = @transform_0, window_bounds = array<i64: 2, 1>}, {transform_indices = @transform_1, window_bounds = array<i64: 2, 8, 16>}, {transform_indices = @transform_2, window_bounds = array<i64: 2, 8>}]} {
    %c0_i32 = arith.constant 0 : i32
    %0 = arith.cmpi eq, %arg2, %c0_i32 : i32
    %1 = arith.extui %0 : i1 to i32
    %c0_i32_0 = arith.constant 0 : i32
    %2 = arith.cmpi ne, %1, %c0_i32_0 : i32
    scf.if %2 {
      %cst_12 = arith.constant 0.000000e+00 : f32
      %23 = vector.broadcast %cst_12 : f32 to vector<2x8xf32>
      %c0_13 = arith.constant 0 : index
      %c0_14 = arith.constant 0 : index
      %24 = vector.load %arg6[%c0_13, %c0_14] : memref<2x8xf32, #tpu.memory_space<vmem>>, vector<2x8xf32>
      tpu.vector_store %arg6[%c0_13, %c0_14], %23 {strides = array<i32>} : memref<2x8xf32, #tpu.memory_space<vmem>>, vector<2x8xf32>,
    } else {
    }
    %c0 = arith.constant 0 : index
    %c0_1 = arith.constant 0 : index
    %c0_2 = arith.constant 0 : index
    %3 = vector.load %arg4[%c0, %c0_1, %c0_2] : memref<2x8x16xf32, #tpu.memory_space<vmem>>, vector<2x8x16xf32>
    %c0_3 = arith.constant 0 : index
    %c0_4 = arith.constant 0 : index
    %4 = vector.load %arg3[%c0_3, %c0_4] : memref<2x1xi32, #tpu.memory_space<vmem>>, vector<2x1xi32>
    %5 = vector.shape_cast %4 : vector<2x1xi32> to vector<2x1x1xi32>
    %6 = tpu.iota {dimensions = array<i32: 2>} : vector<2x1x16xi32>
    %c16_i32 = arith.constant 16 : i32
    %7 = arith.muli %arg2, %c16_i32 : i32
    %8 = vector.broadcast %7 : i32 to vector<2x1x16xi32>
    %9 = arith.addi %6, %8 : vector<2x1x16xi32>
    %10 = vector.broadcast %5 : vector<2x1x1xi32> to vector<2x1x16xi32>
    %11 = arith.cmpi slt, %9, %10 : vector<2x1x16xi32>
    %cst = arith.constant 0.000000e+00 : f32
    %12 = vector.shape_cast %11 : vector<2x1x16xi1> to vector<2x1x16xi1>
    %13 = vector.broadcast %12 : vector<2x1x16xi1> to vector<2x8x16xi1>
    %14 = vector.broadcast %cst : f32 to vector<2x8x16xf32>
    %15 = arith.select %13, %3, %14 : vector<2x8x16xi1>, vector<2x8x16xf32>
    %c0_5 = arith.constant 0 : index
    %c0_6 = arith.constant 0 : index
    %16 = vector.load %arg6[%c0_5, %c0_6] : memref<2x8xf32, #tpu.memory_space<vmem>>, vector<2x8xf32>
    %cst_7 = arith.constant dense<0.000000e+00> : vector<2x8xf32>
    %17 = vector.multi_reduction <add>, %15, %cst_7 [2] : vector<2x8x16xf32> to vector<2x8xf32>
    %18 = arith.addf %16, %17 : vector<2x8xf32>
    %c0_8 = arith.constant 0 : index
    %c0_9 = arith.constant 0 : index
    %19 = vector.load %arg6[%c0_8, %c0_9] : memref<2x8xf32, #tpu.memory_space<vmem>>, vector<2x8xf32>
    tpu.vector_store %arg6[%c0_8, %c0_9], %18 {strides = array<i32>} : memref<2x8xf32, #tpu.memory_space<vmem>>, vector<2x8xf32>,
    %c0_i32_10 = arith.constant 0 : i32
    %20 = arith.cmpi eq, %arg2, %c0_i32_10 : i32
    %21 = arith.extui %20 : i1 to i32
    %c0_i32_11 = arith.constant 0 : i32
    %22 = arith.cmpi ne, %21, %c0_i32_11 : i32
    scf.if %22 {
      %c0_12 = arith.constant 0 : index
      %c0_13 = arith.constant 0 : index
      %23 = vector.load %arg3[%c0_12, %c0_13] : memref<2x1xi32, #tpu.memory_space<vmem>>, vector<2x1xi32>
      %24 = arith.sitofp %23 : vector<2x1xi32> to vector<2x1xf32>
      %cst_14 = arith.constant 1.000000e+00 : f32
      %25 = vector.broadcast %cst_14 : f32 to vector<2x1xf32>
      %26 = arith.divf %25, %24 : vector<2x1xf32>
      %c0_15 = arith.constant 0 : index
      %c0_16 = arith.constant 0 : index
      %27 = vector.load %arg6[%c0_15, %c0_16] : memref<2x8xf32, #tpu.memory_space<vmem>>, vector<2x8xf32>
      %28 = vector.broadcast %26 : vector<2x1xf32> to vector<2x8xf32>
      %29 = arith.mulf %27, %28 : vector<2x8xf32>
      %c0_17 = arith.constant 0 : index
      %c0_18 = arith.constant 0 : index
      %30 = vector.load %arg5[%c0_17, %c0_18] : memref<2x8xf32, #tpu.memory_space<vmem>>, vector<2x8xf32>
      tpu.vector_store %arg5[%c0_17, %c0_18], %29 {strides = array<i32>} : memref<2x8xf32, #tpu.memory_space<vmem>>, vector<2x8xf32>,
    } else {
    }
    return
  }
  func.func @transform_0(%arg0: i32, %arg1: i32, %arg2: i32) -> (i32, i32) {
    %c0_i32 = arith.constant 0 : i32
    %c0_i32_0 = arith.constant 0 : i32
    return %arg0, %c0_i32 : i32, i32
  }
  func.func @transform_1(%arg0: i32, %arg1: i32, %arg2: i32) -> (i32, i32, i32) {
    %c0_i32 = arith.constant 0 : i32
    return %arg0, %arg1, %arg2 : i32, i32, i32
  }
  func.func @transform_2(%arg0: i32, %arg1: i32, %arg2: i32) -> (i32, i32) {
    %c0_i32 = arith.constant 0 : i32
    return %arg0, %arg1 : i32, i32
  }
}

</mosaic_0001>

<bundles_post_ra>
// kernel: tpu_custom_call.1
= control target key start
LH: loop header
LB: loop body
LE: loop exit
PB: predicated region body
PF: predicated region fallthrough
CT: control target
= control target key end

     0   :  { %7 = vsyncpa [#allocation4], 0  ;;  %s220_s0 = inlined_call_operand.vmem [shape: s32[2,1], index: 0, kind: input, shape index: {}]   ;;  %s221_s1 = inlined_call_operand.hbm [shape: f32[2,8,16], index: 1, kind: input, shape index: {}]   ;;  %s222_s2 = inlined_call_operand.hbm [shape: f32[2,8], index: 2, kind: output, shape index: {}]  }
   0x1   :  { %8 = vsyncpa [#allocation5], 0  ;;  %s15_s11 = sshll.u32 %s221_s1, 4  ;;  %s184_s12 = smov [#allocation3]   ;;  %s16_s11 = int_to_ptr.hbm [resolvable:$true] %s15_s11 }
   0x2   :  { %s17_s13 = sshll.u32 %s184_s12, 4  ;;  %s185_s14 = smov 128   ;;  %s18_s13 = int_to_ptr.vmem [resolvable:$true] %s17_s13 }
   0x3   :  { %s186_s15 = smov 8  }
   0x4   :  { %23 = dma.hbm_to_vmem [thread:$0]  %s16_s11, 256, %s18_s13, [#allocation4], %s185_s14, %s185_s14, %s186_s15  }
   0x5   :  { %180 = dma.done.wait [#allocation4], 256  }
   0x6   :  { %181 = vsyncadd [#allocation4], 4294967040  ;;  %v187_v0 = vmov 0   ;;  %v36_v1 = vld [vmem:[%s220_s0] sm:$0x3]  ;;  %v38_v10 = vlaneseq  ;;  %v34_v18 = vld [vmem:[#allocation3] sm:$0xff] }
   0x7   :  { %128 = vset.pattern.permute.xlu0 %v187_v0  ;;  %129 = vset.pattern.permute.xlu2 %v187_v0  ;;  %v37_v2 = vrot.slane %v36_v1, 1  ;;  %v80_v3 = vld [vmem:[%s220_s0] sm:$0x3]  ;;  %vm60_vm4 = vcmask 130048   ;;  %v35_v24 = vld [vmem:[#allocation3 + $0x8] sm:$0xff]  ;;  %vm32_vm7 = vcmask 58368  }
   0x8   :  { %44 = vperm.xlu0 %128, %v36_v1   ;;  %v81_v4 = vcvt.s32.f32 %v80_v3  ;;  %v39_v14 = vand.u32 127, %v38_v10  ;;  %v188_v27 = vmov 0.0   ;;  %vm71_vm8 = vcmask 1041409   ;;  %s189_s0 = smov [#allocation6]   ;;  %s112_s22 = sshll.u32 %s222_s2, 4  ;;  %s113_s22 = int_to_ptr.hbm [resolvable:$true] %s112_s22 }
   0x9   :  { %33 = vst.msk [vmem:[#allocation2] sm:$0x3] %vm32_vm7, %v188_v27  ;;  %s110_s19 = sshll.u32 %s189_s0, 4  ;;  %s111_s19 = int_to_ptr.vmem [resolvable:$true] %s110_s19 }
   0xa   :  { %130 = vrcp.f32 %v81_v4  ;;  %v93_v7 = vand.u32 2147483648, %v81_v4  ;;  %vm87_vm0 = vweird.f32 %v81_v4  ;;  %v91_v9 = vand.u32 2147483647, %v81_v4 }
   0xc   :  { %v94_v12 = vor.u32 1.1754944e-38, %v93_v7  ;;  %vm92_vm3 = vcmp.eq.f32.partialorder %v91_v9, 8.507059e+37 }
  0x10   :  { %48 = vperm.xlu0 %128, %v37_v2   ;;  %v131_v5 = vpop.eup %130  ;;  %v59_v32 = vld [vmem:[#allocation2] sm:$0x3] }
  0x11   :  { %v83_v6 = vmul.f32 %v131_v5, %v81_v4  ;;  %vm88_vm1 = vweird.f32 %v131_v5 }
  0x12   :  { %vm89_vm2 = vmor %vm87_vm0, %vm88_vm1 }
  0x13   :  { %v84_v8 = vsub.f32 1.0, %v83_v6 }
  0x15   :  { %v85_v11 = vmul.f32 %v131_v5, %v84_v8 }
  0x17   :  { %v86_v13 = vadd.f32 %v131_v5, %v85_v11 }
  0x19   :  { %v90_v16 = vsel %vm89_vm2, %v131_v5, %v86_v13 }
  0x1a   :  { %v95_v19 = vsel %vm92_vm3, %v94_v12, %v90_v16 }
  0x1b   :  { %100 = vperm.xlu2 %129, %v95_v19  }
  0x75   :  { %v101_v35 = vpop.permute.xlu2 %100 }
  0x7a   :  { %v45_v15 = vpop.permute.xlu0 %44 }
  0x7b   :  { %v46_v17 = vperm.slane %v45_v15, 0 }
  0x7d   :  { %vm51_vm5 = vcmp.lt.s32.totalorder %v39_v14, %v46_v17 }
  0x7e   :  { %v57_v20 = vsel %vm51_vm5, %v34_v18, 0.0 }
  0x7f   :  { %v61_v21 = vsel %vm60_vm4, %v57_v20, 0.0 }
  0x80   :  { %62 = vadd.xlane.f32.xlu1 %v61_v21 }
  0x82   :  { %v49_v22 = vpop.permute.xlu0 %48 }
  0x83   :  { %v50_v23 = vperm.slane %v49_v22, 0 }
  0x85   :  { %vm52_vm6 = vcmp.lt.s32.totalorder %v39_v14, %v50_v23 }
  0x86   :  { %v58_v25 = vsel %vm52_vm6, %v35_v24, 0.0 }
  0x87   :  { %v64_v26 = vsel %vm60_vm4, %v58_v25, 0.0 }
  0x88   :  { %65 = vadd.xlane.f32.xlu1 %v64_v26 }
  0xf3   :  { %v63_v28 = vpop.xlane.xlu1 %62 }
  0xf4   :  { %v69_v30 = vperm.slane %v63_v28, %v39_v14 }
  0xfb   :  { %v66_v29 = vpop.xlane.xlu1 %65 }
  0xfc   :  { %v70_v31 = vperm.slane %v66_v29, %v39_v14 }
  0xfe   :  { %v72_v33 = vsel %vm71_vm8, %v70_v31, %v69_v30 }
  0xff   :  { %v74_v34 = vadd.f32 %v72_v33, %v59_v32 }
 0x101   :  { %76 = vst.msk [vmem:[#allocation2] sm:$0x3] %vm32_vm7, %v74_v34 }
 0x108   :  { %v97_v36 = vld [vmem:[#allocation2] sm:$0x3] }
 0x109   :  { %v103_v37 = vmul.f32 %v101_v35, %v97_v36 }
 0x10b   :  { %104 = vst.msk [vmem:[#allocation6] sm:$0x3] %vm32_vm7, %v103_v37 }
 0x10c   :  { %115 = dma.vmem_to_hbm [thread:$0]  %s111_s19, 32, %s113_s22, [#allocation5]  }
 0x10d   :  { %182 = dma.done.wait [#allocation5], 32  }
 0x10e   :  { %183 = vsyncadd [#allocation5], 4294967264 }
 0x10f   :  { %120 = vsyncpa [#allocation4], 1 }
 0x110   :  { %121 = vsyncpa [#allocation5], 1 }

</bundles_post_ra>
